<compile_context>
chip_gen: v7x
topology: tpu7x:2x2x1
jax: 0.10.0
libtpu: 0.0.40
codegen_flags: <defaults>
</compile_context>

<pallas_src>
import functools
import math

import jax
import jax.numpy as jnp
from jax import lax
from jax.experimental import pallas as pl
from jax.experimental.pallas import tpu as pltpu


def _round_up(a, b):
    return (a + b - 1) // b * b


def _layernorm_kernel(*refs, eps, has_bias, packed):
    if packed:
        x_ref, seg_ref, w_ref = refs[0], refs[1], refs[2]
        rest = refs[3:]
    else:
        x_ref, w_ref = refs[0], refs[1]
        rest = refs[2:]
    if has_bias:
        b_ref, o_ref = rest
    else:
        b_ref = None
        (o_ref,) = rest

    x = x_ref[...].astype(jnp.float32)      # [block_rows, C]
    w = w_ref[...]                           # [1, C] f32 (pre-cast in wrapper)

    if packed:
        # seg is a (C, C) block-diagonal averaging matrix: x @ seg broadcasts the
        # per-segment (per original row) mean to every column of that segment.
        seg = seg_ref[...]
        mean = jnp.dot(x, seg, preferred_element_type=jnp.float32,
                       precision=lax.Precision.HIGHEST)
        xc = x - mean
        var = jnp.dot(xc * xc, seg, preferred_element_type=jnp.float32,
                      precision=lax.Precision.HIGHEST)
    else:
        mean = jnp.mean(x, axis=-1, keepdims=True)
        xc = x - mean
        var = jnp.mean(xc * xc, axis=-1, keepdims=True)   # biased variance (torch)

    y = xc * lax.rsqrt(var + eps) * w
    if b_ref is not None:
        y = y + b_ref[...]
    o_ref[...] = y.astype(o_ref.dtype)


def openfold_layer_norm(x, weight, bias=None, eps=1e-5, block_rows=None):
    """Pallas TPU LayerNorm over the last axis of x (OpenFoldLayerNorm.forward)."""
    c_in = x.shape[-1]
    assert weight.shape == (c_in,)
    has_bias = bias is not None

    orig_shape = x.shape
    rows = int(math.prod(orig_shape[:-1])) if len(orig_shape) > 1 else 1
    x2d = x.reshape(rows, c_in)

    # Lane packing for narrow feature dims (keeps vregs & stores lane-dense).
    if c_in < 128 and 128 % c_in == 0:
        pack = 128 // c_in
    else:
        # TODO(synk): c_in < 128 with 128 % c_in != 0 still runs correctly but wastes
        # lanes / uses masked stores; consider plain XLA layer_norm for such shapes.
        pack = 1
    packed_c = pack * c_in
    packed = pack > 1

    itemsize = jnp.dtype(x.dtype).itemsize
    rows_p_raw = -(-rows // pack)  # packed rows before padding

    if block_rows is None:
        # ~2 MiB per input tile; 2x double-buffered (in + out) => <= ~8 MiB working set.
        target_tile_bytes = 2 << 20
        br = target_tile_bytes // (packed_c * itemsize)
        br = max(8, min(br, 8192))
        # Don't tile past the actual data.
        br = min(br, _round_up(rows_p_raw, 8))
        # Keep >= 2 grid steps when there is enough work (pipelining + v7x's 2 TCs).
        if rows_p_raw > 16:
            br = min(br, _round_up(-(-rows_p_raw // 2), 8))
        block_rows = br
    block_rows = _round_up(max(int(block_rows), 8), 8)

    rows_p = _round_up(rows_p_raw, block_rows)
    rows_pad = rows_p * pack
    if rows_pad != rows:
        # Zero padding is numerically safe (mean=0, var=0 -> rsqrt(eps) finite);
        # padded rows are sliced off below.
        x2d = jnp.pad(x2d, ((0, rows_pad - rows), (0, 0)))
    xp = x2d.reshape(rows_p, packed_c)

    w_p = jnp.tile(weight.astype(jnp.float32), pack).reshape(1, packed_c)

    inputs = [xp]
    in_specs = [pl.BlockSpec((block_rows, packed_c), lambda i: (i, 0))]
    if packed:
        seg_ids = jnp.arange(packed_c, dtype=jnp.int32) // c_in
        seg_mat = (seg_ids[:, None] == seg_ids[None, :]).astype(jnp.float32) / c_in
        inputs.append(seg_mat)
        in_specs.append(pl.BlockSpec((packed_c, packed_c), lambda i: (0, 0)))
    inputs.append(w_p)
    in_specs.append(pl.BlockSpec((1, packed_c), lambda i: (0, 0)))
    if has_bias:
        b_p = jnp.tile(bias.astype(jnp.float32), pack).reshape(1, packed_c)
        inputs.append(b_p)
        in_specs.append(pl.BlockSpec((1, packed_c), lambda i: (0, 0)))

    grid = (rows_p // block_rows,)

    # Only raise the scoped-VMEM limit if a user-supplied block size needs it;
    # default sizing stays under every generation's scoped default.
    tile_bytes = block_rows * packed_c * itemsize
    working_set = 4 * tile_bytes + (packed_c * packed_c * 4 if packed else 0) \
        + 4 * packed_c * 4
    compiler_kwargs = dict(dimension_semantics=("parallel",))
    if working_set > (12 << 20):
        compiler_kwargs["vmem_limit_bytes"] = min(int(working_set * 3 // 2), 48 << 20)

    out_p = pl.pallas_call(
        functools.partial(_layernorm_kernel, eps=eps, has_bias=has_bias, packed=packed),
        out_shape=jax.ShapeDtypeStruct((rows_p, packed_c), x.dtype),
        grid_spec=pltpu.PrefetchScalarGridSpec(
            num_scalar_prefetch=0,
            grid=grid,
            in_specs=in_specs,
            out_specs=pl.BlockSpec((block_rows, packed_c), lambda i: (i, 0)),
        ),
        compiler_params=pltpu.CompilerParams(**compiler_kwargs),
    )(*inputs)

    out2d = out_p.reshape(rows_pad, c_in)
    if rows_pad != rows:
        out2d = out2d[:rows]
    return out2d.reshape(orig_shape)


def _ref_layer_norm(x, w, b, eps):
    mean = jnp.mean(x, axis=-1, keepdims=True)
    var = jnp.mean((x - mean) ** 2, axis=-1, keepdims=True)
    y = (x - mean) * lax.rsqrt(var + eps) * w
    return y + b if b is not None else y


if __name__ == "__main__":
    key = jax.random.PRNGKey(0)

    # Primary test: shapes implied by the module (small, narrow c_in -> packed path).
    batch, seq, c_in = 2, 8, 32
    weight = jnp.ones((c_in,), dtype=jnp.float32)   # module init: weight=ones
    bias = jnp.zeros((c_in,), dtype=jnp.float32)    # module init: bias=zeros
    x = jax.random.normal(key, (batch, seq, c_in), dtype=jnp.float32)

    out = jax.block_until_ready(openfold_layer_norm(x, weight, bias, eps=1e-5))
    ref = _ref_layer_norm(x, weight, bias, 1e-5)
    assert jnp.allclose(out, ref, atol=1e-5, rtol=1e-5)

    # Secondary test: c_in >= 128 (unpacked path), odd row count (padding path),
    # no bias, grid > 1.
    c2 = 128
    w2 = jax.random.normal(jax.random.PRNGKey(1), (c2,), dtype=jnp.float32)
    x2 = jax.random.normal(jax.random.PRNGKey(2), (3, 11, c2), dtype=jnp.float32)
    out2 = jax.block_until_ready(openfold_layer_norm(x2, w2, None, eps=1e-5))
    ref2 = _ref_layer_norm(x2, w2, None, 1e-5)
    assert jnp.allclose(out2, ref2, atol=1e-5, rtol=1e-5)

    print("KERNEL_OK")
</pallas_src>

<mosaic_0001>
module attributes {stable_mosaic.version = 11 : i64} {
  func.func @_layernorm_kernel(%arg0: i32, %arg1: memref<8x128xf32, #tpu.memory_space<vmem>>, %arg2: memref<128x128xf32, #tpu.memory_space<vmem>>, %arg3: memref<1x128xf32, #tpu.memory_space<vmem>>, %arg4: memref<1x128xf32, #tpu.memory_space<vmem>>, %arg5: memref<8x128xf32, #tpu.memory_space<vmem>>) attributes {dimension_semantics = [#tpu.dimension_semantics<parallel>], iteration_bounds = array<i64: 1>, scalar_prefetch = 0 : i64, scratch_operands = 0 : i64, tpu.core_type = #tpu.core_type<tc>, window_params = [{transform_indices = @transform_0, window_bounds = array<i64: 8, 128>}, {pipeline_mode = #tpu.pipeline_mode<synchronous>, transform_indices = @transform_1, window_bounds = array<i64: 128, 128>}, {pipeline_mode = #tpu.pipeline_mode<synchronous>, transform_indices = @transform_2, window_bounds = array<i64: 1, 128>}, {pipeline_mode = #tpu.pipeline_mode<synchronous>, transform_indices = @transform_3, window_bounds = array<i64: 1, 128>}, {transform_indices = @transform_4, window_bounds = array<i64: 8, 128>}]} {
    %c0 = arith.constant 0 : index
    %c0_0 = arith.constant 0 : index
    %0 = vector.load %arg1[%c0, %c0_0] : memref<8x128xf32, #tpu.memory_space<vmem>>, vector<8x128xf32>
    %c0_1 = arith.constant 0 : index
    %c0_2 = arith.constant 0 : index
    %1 = vector.load %arg3[%c0_1, %c0_2] : memref<1x128xf32, #tpu.memory_space<vmem>>, vector<1x128xf32>
    %c0_3 = arith.constant 0 : index
    %c0_4 = arith.constant 0 : index
    %2 = vector.load %arg2[%c0_3, %c0_4] : memref<128x128xf32, #tpu.memory_space<vmem>>, vector<128x128xf32>
    %cst = arith.constant dense<0.000000e+00> : vector<8x128xf32>
    %3 = tpu.matmul %0, %2, %cst {dimension_numbers = #tpu.dot_dimension_numbers<[1], [0], [0], [1], [0, 0, 1, 1], [], []>, precision = #tpu.contract_precision<fp32>} : vector<8x128xf32>, vector<128x128xf32>, vector<8x128xf32> -> vector<8x128xf32>
    %4 = arith.subf %0, %3 : vector<8x128xf32>
    %5 = arith.mulf %4, %4 : vector<8x128xf32>
    %cst_5 = arith.constant dense<0.000000e+00> : vector<8x128xf32>
    %6 = tpu.matmul %5, %2, %cst_5 {dimension_numbers = #tpu.dot_dimension_numbers<[1], [0], [0], [1], [0, 0, 1, 1], [], []>, precision = #tpu.contract_precision<fp32>} : vector<8x128xf32>, vector<128x128xf32>, vector<8x128xf32> -> vector<8x128xf32>
    %cst_6 = arith.constant 9.99999974E-6 : f32
    %7 = vector.broadcast %cst_6 : f32 to vector<8x128xf32>
    %8 = arith.addf %6, %7 : vector<8x128xf32>
    %9 = math.rsqrt %8 : vector<8x128xf32>
    %10 = arith.mulf %4, %9 : vector<8x128xf32>
    %11 = vector.broadcast %1 : vector<1x128xf32> to vector<8x128xf32>
    %12 = arith.mulf %10, %11 : vector<8x128xf32>
    %c0_7 = arith.constant 0 : index
    %c0_8 = arith.constant 0 : index
    %13 = vector.load %arg4[%c0_7, %c0_8] : memref<1x128xf32, #tpu.memory_space<vmem>>, vector<1x128xf32>
    %14 = vector.broadcast %13 : vector<1x128xf32> to vector<8x128xf32>
    %15 = arith.addf %12, %14 : vector<8x128xf32>
    %c0_9 = arith.constant 0 : index
    %c0_10 = arith.constant 0 : index
    %16 = vector.load %arg5[%c0_9, %c0_10] : memref<8x128xf32, #tpu.memory_space<vmem>>, vector<8x128xf32>
    tpu.vector_store %arg5[%c0_9, %c0_10], %15 {strides = array<i32>} : memref<8x128xf32, #tpu.memory_space<vmem>>, vector<8x128xf32>,
    return
  }
  func.func @transform_0(%arg0: i32) -> (i32, i32) {
    %c0_i32 = arith.constant 0 : i32
    %c0_i32_0 = arith.constant 0 : i32
    return %arg0, %c0_i32 : i32, i32
  }
  func.func @transform_1(%arg0: i32) -> (i32, i32) {
    %c0_i32 = arith.constant 0 : i32
    %c0_i32_0 = arith.constant 0 : i32
    %c0_i32_1 = arith.constant 0 : i32
    return %c0_i32, %c0_i32_0 : i32, i32
  }
  func.func @transform_2(%arg0: i32) -> (i32, i32) {
    %c0_i32 = arith.constant 0 : i32
    %c0_i32_0 = arith.constant 0 : i32
    %c0_i32_1 = arith.constant 0 : i32
    return %c0_i32, %c0_i32_0 : i32, i32
  }
  func.func @transform_3(%arg0: i32) -> (i32, i32) {
    %c0_i32 = arith.constant 0 : i32
    %c0_i32_0 = arith.constant 0 : i32
    %c0_i32_1 = arith.constant 0 : i32
    return %c0_i32, %c0_i32_0 : i32, i32
  }
  func.func @transform_4(%arg0: i32) -> (i32, i32) {
    %c0_i32 = arith.constant 0 : i32
    %c0_i32_0 = arith.constant 0 : i32
    return %arg0, %c0_i32 : i32, i32
  }
}

</mosaic_0001>

<bundles_post_ra>
// kernel: tpu_custom_call.1
= control target key start
LH: loop header
LB: loop body
LE: loop exit
PB: predicated region body
PF: predicated region fallthrough
CT: control target
= control target key end

     0   :  { %9 = vsyncpa [#allocation3], 0  ;;  %s2870_s0 = inlined_call_operand.hbm [shape: f32[8,128], index: 0, kind: input, shape index: {}]   ;;  %s2871_s1 = inlined_call_operand.hbm [shape: f32[128,128], index: 1, kind: input, shape index: {}]   ;;  %s2872_s2 = inlined_call_operand.vmem [shape: f32[1,128], index: 2, kind: input, shape index: {}]   ;;  %s2873_s3 = inlined_call_operand.vmem [shape: f32[1,128], index: 3, kind: input, shape index: {}]   ;;  %s2874_s4 = inlined_call_operand.hbm [shape: f32[8,128], index: 4, kind: output, shape index: {}]  }
   0x1   :  { %10 = vsyncpa [#allocation6], 0 }
   0x2   :  { %11 = vsyncpa [#allocation4], 0  ;;  %s2397_s15 = smov [#allocation2]   ;;  %s2398_s17 = smov [#allocation5]  }
   0x3   :  { %s18_s16 = sshll.u32 %s2397_s15, 4  ;;  %s27_s18 = sshll.u32 %s2398_s17, 4  ;;  %s19_s16 = int_to_ptr.vmem [resolvable:$true] %s18_s16  ;;  %s2430_s18 = int_to_ptr.vmem [resolvable:$true] %s27_s18 }
   0x4   :  { %s2325_s21 = scalar_lea.hbm %s2870_s0, 128 }
   0x5   :  { %p2326_p0 = scmp.ne.s32.totalorder %s2870_s0, %s2325_s21  ;;  %p2329_p1 = scmp.lt.u32.totalorder %s2325_s21, %s2870_s0 }
   0x7   :  { %p2331_p2 = pnand %p2329_p1, %p2326_p0 }
   0x9   :  { %2334 = shalt.err (!%p2331_p2)
}
   0xa   :  { %s2335_s26 = scalar_lea.vmem %s19_s16, 128  ;;  %p2340_p4 = scmp.lt.s32.totalorder %s19_s16, %s19_s16 }
   0xb   :  { %p2336_p3 = scmp.ne.s32.totalorder %s19_s16, %s2335_s26  ;;  %p2341_p5 = scmp.lt.s32.totalorder %s2335_s26, %s2335_s26 }
   0xd   :  { %p2342_p6 = por %p2341_p5, %p2340_p4 }
   0xf   :  { %p2343_p7 = pnand %p2342_p6, %p2336_p3 }
  0x11   :  { %2346 = shalt.err (!%p2343_p7)
}
  0x12   :  { %21 = dma.hbm_to_vmem [thread:$0]  %s2870_s0, 128, %s19_s16, [#allocation3]  }
  0x13   :  { %s2347_s5 = scalar_lea.hbm %s2871_s1, 2048 }
  0x14   :  { %p2348_p8 = scmp.ne.s32.totalorder %s2871_s1, %s2347_s5  ;;  %p2351_p9 = scmp.lt.u32.totalorder %s2347_s5, %s2871_s1 }
  0x16   :  { %p2353_p10 = pnand %p2351_p9, %p2348_p8 }
  0x18   :  { %2356 = shalt.err (!%p2353_p10)
}
  0x19   :  { %s2357_s10 = scalar_lea.vmem %s2430_s18, 2048  ;;  %p2362_p12 = scmp.lt.s32.totalorder %s2430_s18, %s2430_s18 }
  0x1a   :  { %p2358_p11 = scmp.ne.s32.totalorder %s2430_s18, %s2357_s10  ;;  %p2363_p13 = scmp.lt.s32.totalorder %s2357_s10, %s2357_s10 }
  0x1c   :  { %p2364_p0 = por %p2363_p13, %p2362_p12 }
  0x1e   :  { %p2365_p1 = pnand %p2364_p0, %p2358_p11 }
  0x20   :  { %2368 = shalt.err (!%p2365_p1)
}
  0x21   :  { %s2399_s0 = smov 128   ;;  %s2400_s11 = smov 8  }
  0x22   :  { %33 = dma.hbm_to_vmem [thread:$0]  %s2871_s1, 2048, %s2430_s18, [#allocation6], %s2399_s0, %s2399_s0, %s2400_s11  }
  0x23   :  { %2391 = dma.done.wait [#allocation3], 128  }
  0x24   :  { %2392 = vsyncadd [#allocation3], 4294967168 }
  0x25   :  { %2393 = dma.done.wait [#allocation6], 2048  }
  0x26   :  { %2394 = vsyncadd [#allocation6], 4294965248  ;;  %v2401_v0 = vmov 0.0|0.0   ;;  %vm2402_vm0 = vmmov 0   ;;  %v2403_v1 = vmov 0.0   ;;  %v46_v2 = vld [vmem:[#allocation5] sm:$0xff] }
  0x27   :  { %2006 = vmatprep.subr.bf16.mxu0 %v2401_v0  ;;  %1618 = vmatprep.mubr.msk.f32.mxu0 %vm2402_vm0, %v2403_v1  ;;  %v47_v3 = vld [vmem:[#allocation5 + $0x8] sm:$0xff]  ;;  %v48_v4 = vld [vmem:[#allocation5 + $0x10] sm:$0xff]  ;;  %v63_v5 = vand.u32 4294901760, %v46_v2  ;;  %v49_v7 = vld [vmem:[#allocation5 + $0x18] sm:$0xff]  ;;  %s2404_s17 = smov [#allocation7]  }
  0x28   :  { %2150 = vmatprep.subr.bf16.mxu1 %v2401_v0  ;;  %1828 = vmatprep.mubr.msk.f32.mxu1 %vm2402_vm0, %v2403_v1  ;;  %v66_v6 = vand.u32 4294901760, %v47_v3  ;;  %v69_v8 = vand.u32 4294901760, %v48_v4  ;;  %v72_v9 = vand.u32 4294901760, %v49_v7  ;;  %v50_v10 = vld [vmem:[#allocation5 + $0x20] sm:$0xff]  ;;  %v51_v11 = vld [vmem:[#allocation5 + $0x28] sm:$0xff]  ;;  %v52_v16 = vld [vmem:[#allocation5 + $0x30] sm:$0xff] }
  0x29   :  { %v75_v14 = vand.u32 4294901760, %v50_v10  ;;  %v78_v15 = vand.u32 4294901760, %v51_v11  ;;  %v53_v17 = vld [vmem:[#allocation5 + $0x38] sm:$0xff]  ;;  %v81_v19 = vand.u32 4294901760, %v52_v16  ;;  %v54_v21 = vld [vmem:[#allocation5 + $0x40] sm:$0xff]  ;;  %v55_v23 = vld [vmem:[#allocation5 + $0x48] sm:$0xff]  ;;  %v2489_v34 = vsub.f32 %v46_v2, %v63_v5 }
  0x2a   :  { %v2467_v12 = vpack.c.bf16 %v66_v6, %v63_v5  ;;  %v2470_v13 = vpack.c.bf16 %v72_v9, %v69_v8  ;;  %v84_v20 = vand.u32 4294901760, %v53_v17  ;;  %v2478_v22 = vld [vmem:[#allocation2] sm:$0xff]  ;;  %v56_v24 = vld [vmem:[#allocation5 + $0x50] sm:$0xff]  ;;  %v58_v26 = vld [vmem:[#allocation5 + $0x60] sm:$0xff]  ;;  %v87_v27 = vand.u32 4294901760, %v54_v21  ;;  %s1370_s18 = sshll.u32 %s2404_s17, 4  ;;  %s1371_s18 = int_to_ptr.vmem [resolvable:$true] %s1370_s18 }
  0x2b   :  { %v2476_v18 = vpack.c.bf16 %v78_v15, %v75_v14  ;;  %v57_v25 = vld [vmem:[#allocation5 + $0x58] sm:$0xff]  ;;  %v59_v28 = vld [vmem:[#allocation5 + $0x68] sm:$0xff]  ;;  %v60_v29 = vld [vmem:[#allocation5 + $0x70] sm:$0xff]  ;;  %v2484_v31 = vand.u32 4294901760, %v2478_v22  ;;  %v90_v33 = vand.u32 4294901760, %v55_v23  ;;  %v2491_v35 = vsub.f32 %v47_v3, %v66_v6  ;;  %s2369_s19 = scalar_lea.vmem %s1371_s18, 128  ;;  %p2374_p3 = scmp.lt.s32.totalorder %s1371_s18, %s1371_s18 }
  0x2c   :  { %2008 = vmatpush3.bf16.msra.mxu0 %v2467_v12  ;;  %2152 = vmatpush3.bf16.msra.mxu1 %v2467_v12  ;;  %v61_v30 = vld [vmem:[#allocation5 + $0x78] sm:$0xff]  ;;  %v2487_v32 = vpack.c.bf16 %v84_v20, %v81_v19  ;;  %v93_v36 = vand.u32 4294901760, %v56_v24  ;;  %v96_v37 = vand.u32 4294901760, %v57_v25  ;;  %v99_v38 = vand.u32 4294901760, %v58_v26  ;;  %p2370_p2 = scmp.ne.s32.totalorder %s1371_s18, %s2369_s19  ;;  %p2375_p4 = scmp.lt.s32.totalorder %s2369_s19, %s2369_s19 }
  0x2d   :  { %2009 = vmatprep.subr.bf16.mxu0 %v2401_v0  ;;  %2153 = vmatprep.subr.bf16.mxu1 %v2401_v0  ;;  %v102_v39 = vand.u32 4294901760, %v59_v28  ;;  %v105_v40 = vand.u32 4294901760, %v60_v29  ;;  %v108_v41 = vand.u32 4294901760, %v61_v30  ;;  %v2498_v42 = vsub.f32 %v2478_v22, %v2484_v31 }
  0x2e   :  { %v2500_v43 = vsub.f32 %v48_v4, %v69_v8  ;;  %v2503_v44 = vpack.c.bf16 %v90_v33, %v87_v27  ;;  %v156_v45 = vand.u32 4294901760, %v2489_v34  ;;  %v163_v46 = vand.u32 4294901760, %v2491_v35  ;;  %p2376_p5 = por %p2375_p4, %p2374_p3 }
  0x2f   :  { %v2507_v47 = vsub.f32 %v49_v7, %v72_v9  ;;  %v2511_v48 = vsub.f32 %v50_v10, %v75_v14  ;;  %v2514_v49 = vpack.c.bf16 %v96_v37, %v93_v36  ;;  %v2516_v50 = vpack.c.bf16 %v102_v39, %v99_v38 }
  0x30   :  { %2011 = vmatpush3.bf16.msra.mxu0 %v2470_v13  ;;  %2155 = vmatpush3.bf16.msra.mxu1 %v2470_v13  ;;  %v2518_v51 = vpack.c.bf16 %v108_v41, %v105_v40  ;;  %v145_v52 = vand.u32 4294901760, %v2498_v42  ;;  %v170_v53 = vand.u32 4294901760, %v2500_v43  ;;  %v2522_v54 = vsub.f32 %v51_v11, %v78_v15  ;;  %p2377_p6 = pnand %p2376_p5, %p2370_p2 }
  0x31   :  { %2012 = vmatprep.subr.bf16.mxu0 %v2401_v0  ;;  %2156 = vmatprep.subr.bf16.mxu1 %v2401_v0  ;;  %v2524_v55 = vsub.f32 %v52_v16, %v81_v19  ;;  %v157_v56 = vsub.f32 %v2489_v34, %v156_v45  ;;  %v164_v57 = vsub.f32 %v2491_v35, %v163_v46  ;;  %v177_v58 = vand.u32 4294901760, %v2507_v47 }
  0x32   :  { %v2530_v59 = vsub.f32 %v53_v17, %v84_v20  ;;  %v184_v60 = vand.u32 4294901760, %v2511_v48  ;;  %v2535_v61 = vsub.f32 %v54_v21, %v87_v27  ;;  %v2537_v62 = vsub.f32 %v55_v23, %v90_v33 }
  0x33   :  { %v2539_v63 = vsub.f32 %v56_v24, %v93_v36  ;;  %v2542_v2 = vsub.f32 %v57_v25, %v96_v37  ;;  %v2544_v3 = vsub.f32 %v58_v26, %v99_v38  ;;  %v2546_v4 = vsub.f32 %v59_v28, %v102_v39 }
  0x34   :  { %2014 = vmatpush3.bf16.msra.mxu0 %v2476_v18  ;;  %2158 = vmatpush3.bf16.msra.mxu1 %v2476_v18  ;;  %v2548_v5 = vsub.f32 %v60_v29, %v105_v40  ;;  %v146_v6 = vsub.f32 %v2498_v42, %v145_v52  ;;  %v171_v7 = vsub.f32 %v2500_v43, %v170_v53  ;;  %v191_v8 = vand.u32 4294901760, %v2522_v54 }
  0x35   :  { %2015 = vmatprep.subr.bf16.mxu0 %v2401_v0  ;;  %2159 = vmatprep.subr.bf16.mxu1 %v2401_v0  ;;  %v2555_v9 = vsub.f32 %v61_v30, %v108_v41  ;;  %v158_v10 = vand.u32 4294901760, %v157_v56  ;;  %v165_v11 = vand.u32 4294901760, %v164_v57  ;;  %v178_v14 = vsub.f32 %v2507_v47, %v177_v58 }
  0x36   :  { %v198_v15 = vand.u32 4294901760, %v2524_v55  ;;  %v205_v16 = vand.u32 4294901760, %v2530_v59  ;;  %v212_v17 = vand.u32 4294901760, %v2535_v61  ;;  %v219_v19 = vand.u32 4294901760, %v2537_v62 }
  0x37   :  { %v226_v20 = vand.u32 4294901760, %v2539_v63  ;;  %v233_v21 = vand.u32 4294901760, %v2542_v2  ;;  %v240_v23 = vand.u32 4294901760, %v2544_v3  ;;  %v247_v24 = vand.u32 4294901760, %v2546_v4 }
  0x38   :  { %2017 = vmatpush3.bf16.msra.mxu0 %v2487_v32  ;;  %2161 = vmatpush3.bf16.msra.mxu1 %v2487_v32  ;;  %v254_v25 = vand.u32 4294901760, %v2548_v5  ;;  %v261_v26 = vand.u32 4294901760, %v2555_v9  ;;  %v2572_v27 = vpack.c.bf16 %v163_v46, %v156_v45  ;;  %v2574_v28 = vpack.c.bf16 %v177_v58, %v170_v53 }
  0x39   :  { %2018 = vmatprep.subr.bf16.mxu0 %v2401_v0  ;;  %2162 = vmatprep.subr.bf16.mxu1 %v2401_v0  ;;  %v2576_v29 = vpack.c.bf16 %v191_v8, %v184_v60  ;;  %v2579_v30 = vpack.c.bf16 %v205_v16, %v198_v15  ;;  %v2581_v33 = vpack.c.bf16 %v219_v19, %v212_v17  ;;  %v147_v39 = vand.u32 4294901760, %v146_v6 }
  0x3a   :  { %v2583_v36 = vpack.c.bf16 %v233_v21, %v226_v20  ;;  %v2585_v37 = vpack.c.bf16 %v247_v24, %v240_v23  ;;  %v2588_v38 = vpack.c.bf16 %v261_v26, %v254_v25  ;;  %v185_v40 = vsub.f32 %v2511_v48, %v184_v60 }
  0x3b   :  { %v2594_v41 = vpack.c.bf16 %v165_v11, %v158_v10  ;;  %v172_v45 = vand.u32 4294901760, %v171_v7  ;;  %v179_v46 = vand.u32 4294901760, %v178_v14  ;;  %v192_v53 = vsub.f32 %v2522_v54, %v191_v8 }
  0x3c   :  { %2020 = vmatpush3.bf16.msra.mxu0 %v2503_v44  ;;  %2164 = vmatpush3.bf16.msra.mxu1 %v2503_v44  ;;  %v199_v56 = vsub.f32 %v2524_v55, %v198_v15  ;;  %v186_v58 = vand.u32 4294901760, %v185_v40  ;;  %v206_v6 = vsub.f32 %v2530_v59, %v205_v16  ;;  %v213_v11 = vsub.f32 %v2535_v61, %v212_v17 }
  0x3d   :  { %2021 = vmatprep.subr.bf16.mxu0 %v2401_v0  ;;  %2165 = vmatprep.subr.bf16.mxu1 %v2401_v0  ;;  %v2602_v57 = vpack.c.bf16 %v179_v46, %v172_v45  ;;  %v193_v60 = vand.u32 4294901760, %v192_v53  ;;  %v220_v14 = vsub.f32 %v2537_v62, %v219_v19  ;;  %v227_v15 = vsub.f32 %v2539_v63, %v226_v20 }
  0x3e   :  { %v200_v7 = vand.u32 4294901760, %v199_v56  ;;  %v207_v10 = vand.u32 4294901760, %v206_v6  ;;  %v234_v45 = vsub.f32 %v2542_v2, %v233_v21  ;;  %v241_v46 = vsub.f32 %v2544_v3, %v240_v23 }
  0x3f   :  { %v2609_v8 = vpack.c.bf16 %v193_v60, %v186_v58  ;;  %v221_v40 = vand.u32 4294901760, %v220_v14  ;;  %v228_v19 = vand.u32 4294901760, %v227_v15  ;;  %v248_v20 = vsub.f32 %v2546_v4, %v247_v24 }
  0x40   :  { %2023 = vmatpush3.bf16.msra.mxu0 %v2514_v49  ;;  %2167 = vmatpush3.bf16.msra.mxu1 %v2514_v49  ;;  %v2616_v16 = vpack.c.bf16 %v207_v10, %v200_v7  ;;  %v235_v53 = vand.u32 4294901760, %v234_v45  ;;  %v255_v56 = vsub.f32 %v2548_v5, %v254_v25  ;;  %v242_v21 = vand.u32 4294901760, %v241_v46 }
  0x41   :  { %2024 = vmatprep.subr.bf16.mxu0 %v2401_v0  ;;  %2168 = vmatprep.subr.bf16.mxu1 %v2401_v0  ;;  %v249_v60 = vand.u32 4294901760, %v248_v20  ;;  %v262_v23 = vsub.f32 %v2555_v9, %v261_v26  ;;  %v2643_v26 = vpack.c.bf16 %v2491_v35, %v2489_v34  ;;  %v2650_v10 = vpack.c.bf16 %v2507_v47, %v2500_v43 }
  0x42   :  { %v2628_v58 = vpack.c.bf16 %v235_v53, %v228_v19  ;;  %v256_v7 = vand.u32 4294901760, %v255_v56  ;;  %v2658_v34 = vpack.c.bf16 %v2522_v54, %v2511_v48  ;;  %v2664_v35 = vpack.c.bf16 %v2530_v59, %v2524_v55 }
  0x43   :  { %v2633_v6 = vpack.c.bf16 %v249_v60, %v242_v21  ;;  %v263_v24 = vand.u32 4294901760, %v262_v23  ;;  %v2670_v43 = vpack.c.bf16 %v2537_v62, %v2535_v61  ;;  %v2676_v47 = vpack.c.bf16 %v2542_v2, %v2539_v63 }
  0x44   :  { %2026 = vmatpush3.bf16.msra.mxu0 %v2516_v50  ;;  %2170 = vmatpush3.bf16.msra.mxu1 %v2516_v50  ;;  %v2682_v48 = vpack.c.bf16 %v2546_v4, %v2544_v3  ;;  %v2688_v54 = vpack.c.bf16 %v2555_v9, %v2548_v5 }
  0x45   :  { %2027 = vmatprep.subr.bf16.mxu0 %v2401_v0  ;;  %2171 = vmatprep.subr.bf16.mxu1 %v2401_v0  ;;  %v2637_v25 = vpack.c.bf16 %v263_v24, %v256_v7 }
  0x48   :  { %2029 = vmatpush3.bf16.msra.mxu0 %v2518_v51  ;;  %2173 = vmatpush3.bf16.msra.mxu1 %v2518_v51 }
  0x49   :  { %2030 = vmatprep.subr.bf16.mxu0 %v2401_v0  ;;  %2174 = vmatprep.subr.bf16.mxu1 %v2401_v0 }
  0x4b   :  { %1619 = vmatmul.mubr.f32.vlgmr.msra.gmra.mrb[0].mxu0 %v147_v39  ;;  %v214_v39 = vand.u32 4294901760, %v213_v11 }
  0x4c   :  { %2032 = vmatpush3.bf16.msra.mxu0 %v2594_v41  ;;  %1653 = vmatprep.mubr.msk.f32.mxu0 %vm2402_vm0, %v2403_v1 }
  0x4d   :  { %2033 = vmatprep.subr.bf16.mxu0 %v2401_v0  ;;  %v2622_v17 = vpack.c.bf16 %v221_v40, %v214_v39 }
  0x50   :  { %2035 = vmatpush3.bf16.msra.mxu0 %v2602_v57 }
  0x51   :  { %2036 = vmatprep.subr.bf16.mxu0 %v2401_v0 }
  0x54   :  { %2038 = vmatpush3.bf16.msra.mxu0 %v2609_v8 }
  0x55   :  { %2039 = vmatprep.subr.bf16.mxu0 %v2401_v0 }
  0x58   :  { %2041 = vmatpush3.bf16.msra.mxu0 %v2616_v16 }
  0x59   :  { %2042 = vmatprep.subr.bf16.mxu0 %v2401_v0 }
  0x5c   :  { %2044 = vmatpush3.bf16.msra.mxu0 %v2622_v17 }
  0x5d   :  { %2045 = vmatprep.subr.bf16.mxu0 %v2401_v0 }
  0x60   :  { %2047 = vmatpush3.bf16.msra.mxu0 %v2628_v58 }
  0x61   :  { %2048 = vmatprep.subr.bf16.mxu0 %v2401_v0 }
  0x64   :  { %2050 = vmatpush3.bf16.msra.mxu0 %v2633_v6 }
  0x65   :  { %2051 = vmatprep.subr.bf16.mxu0 %v2401_v0 }
  0x68   :  { %2053 = vmatpush3.bf16.msra.mxu0 %v2637_v25 }
  0x69   :  { %2054 = vmatprep.subr.bf16.mxu0 %v2401_v0 }
  0x6b   :  { %1654 = vmatmul.mubr.f32.vlgmr.msra.gmra.mrb[0].mxu0 %v2484_v31 }
  0x6c   :  { %2056 = vmatpush3.bf16.msra.mxu0 %v2643_v26  ;;  %1688 = vmatprep.mubr.msk.f32.mxu0 %vm2402_vm0, %v2403_v1 }
  0x6d   :  { %2057 = vmatprep.subr.bf16.mxu0 %v2401_v0 }
  0x70   :  { %2059 = vmatpush3.bf16.msra.mxu0 %v2650_v10 }
  0x71   :  { %2060 = vmatprep.subr.bf16.mxu0 %v2401_v0 }
  0x74   :  { %2062 = vmatpush3.bf16.msra.mxu0 %v2658_v34 }
  0x75   :  { %2063 = vmatprep.subr.bf16.mxu0 %v2401_v0 }
  0x78   :  { %2065 = vmatpush3.bf16.msra.mxu0 %v2664_v35 }
  0x79   :  { %2066 = vmatprep.subr.bf16.mxu0 %v2401_v0 }
  0x7c   :  { %2068 = vmatpush3.bf16.msra.mxu0 %v2670_v43 }
  0x7d   :  { %2069 = vmatprep.subr.bf16.mxu0 %v2401_v0 }
  0x80   :  { %2071 = vmatpush3.bf16.msra.mxu0 %v2676_v47 }
  0x81   :  { %2072 = vmatprep.subr.bf16.mxu0 %v2401_v0 }
  0x84   :  { %2074 = vmatpush3.bf16.msra.mxu0 %v2682_v48 }
  0x85   :  { %2075 = vmatprep.subr.bf16.mxu0 %v2401_v0 }
  0x88   :  { %2077 = vmatpush3.bf16.msra.mxu0 %v2688_v54 }
  0x89   :  { %2078 = vmatprep.subr.bf16.mxu0 %v2401_v0 }
  0x8b   :  { %1689 = vmatmul.mubr.f32.vlgmr.msra.gmra.mrb[0].mxu0 %v2498_v42 }
  0x8c   :  { %2080 = vmatpush3.bf16.msra.mxu0 %v2467_v12  ;;  %1723 = vmatprep.mubr.msk.f32.mxu0 %vm2402_vm0, %v2403_v1 }
  0x8d   :  { %2081 = vmatprep.subr.bf16.mxu0 %v2401_v0 }
  0x90   :  { %2083 = vmatpush3.bf16.msra.mxu0 %v2470_v13 }
  0x91   :  { %2084 = vmatprep.subr.bf16.mxu0 %v2401_v0 }
  0x94   :  { %2086 = vmatpush3.bf16.msra.mxu0 %v2476_v18 }
  0x95   :  { %2087 = vmatprep.subr.bf16.mxu0 %v2401_v0 }
  0x98   :  { %2089 = vmatpush3.bf16.msra.mxu0 %v2487_v32 }
  0x99   :  { %2090 = vmatprep.subr.bf16.mxu0 %v2401_v0 }
  0x9c   :  { %2092 = vmatpush3.bf16.msra.mxu0 %v2503_v44 }
  0x9d   :  { %2093 = vmatprep.subr.bf16.mxu0 %v2401_v0 }
  0xa0   :  { %2095 = vmatpush3.bf16.msra.mxu0 %v2514_v49 }
  0xa1   :  { %2096 = vmatprep.subr.bf16.mxu0 %v2401_v0 }
  0xa4   :  { %2098 = vmatpush3.bf16.msra.mxu0 %v2516_v50 }
  0xa5   :  { %2099 = vmatprep.subr.bf16.mxu0 %v2401_v0 }
  0xa8   :  { %2101 = vmatpush3.bf16.msra.mxu0 %v2518_v51 }
  0xa9   :  { %2102 = vmatprep.subr.bf16.mxu0 %v2401_v0 }
  0xab   :  { %1724 = vmatmul.mubr.f32.vlgmr.msra.gmra.mrb[0].mxu0 %v145_v52 }
  0xac   :  { %2104 = vmatpush3.bf16.msra.mxu0 %v2572_v27  ;;  %1758 = vmatprep.mubr.msk.f32.mxu0 %vm2402_vm0, %v2403_v1 }
  0xad   :  { %2105 = vmatprep.subr.bf16.mxu0 %v2401_v0 }
  0xb0   :  { %2107 = vmatpush3.bf16.msra.mxu0 %v2574_v28 }
  0xb1   :  { %2108 = vmatprep.subr.bf16.mxu0 %v2401_v0 }
  0xb4   :  { %2110 = vmatpush3.bf16.msra.mxu0 %v2576_v29 }
  0xb5   :  { %2111 = vmatprep.subr.bf16.mxu0 %v2401_v0 }
  0xb8   :  { %2113 = vmatpush3.bf16.msra.mxu0 %v2579_v30 }
  0xb9   :  { %2114 = vmatprep.subr.bf16.mxu0 %v2401_v0 }
  0xbc   :  { %2116 = vmatpush3.bf16.msra.mxu0 %v2581_v33 }
  0xbd   :  { %2117 = vmatprep.subr.bf16.mxu0 %v2401_v0 }
  0xc0   :  { %2119 = vmatpush3.bf16.msra.mxu0 %v2583_v36 }
  0xc1   :  { %2120 = vmatprep.subr.bf16.mxu0 %v2401_v0 }
  0xc4   :  { %2122 = vmatpush3.bf16.msra.mxu0 %v2585_v37 }
  0xc5   :  { %2123 = vmatprep.subr.bf16.mxu0 %v2401_v0 }
  0xc8   :  { %2125 = vmatpush3.bf16.msra.mxu0 %v2588_v38 }
  0xc9   :  { %2126 = vmatprep.subr.bf16.mxu0 %v2401_v0 }
  0xcb   :  { %1759 = vmatmul.mubr.f32.vlgmr.msra.gmra.mrb[0].mxu0 %v2484_v31 }
  0xcc   :  { %2128 = vmatpush3.bf16.msra.mxu0 %v2467_v12  ;;  %1793 = vmatprep.mubr.msk.f32.mxu0 %vm2402_vm0, %v2403_v1 }
  0xcd   :  { %2129 = vmatprep.subr.bf16.mxu0 %v2401_v0 }
  0xd0   :  { %2131 = vmatpush3.bf16.msra.mxu0 %v2470_v13 }
  0xd1   :  { %2132 = vmatprep.subr.bf16.mxu0 %v2401_v0 }
  0xd4   :  { %2134 = vmatpush3.bf16.msra.mxu0 %v2476_v18 }
  0xd5   :  { %2135 = vmatprep.subr.bf16.mxu0 %v2401_v0 }
  0xd8   :  { %2137 = vmatpush3.bf16.msra.mxu0 %v2487_v32 }
  0xd9   :  { %2138 = vmatprep.subr.bf16.mxu0 %v2401_v0 }
  0xdc   :  { %2140 = vmatpush3.bf16.msra.mxu0 %v2503_v44 }
  0xdd   :  { %2141 = vmatprep.subr.bf16.mxu0 %v2401_v0 }
  0xe0   :  { %2143 = vmatpush3.bf16.msra.mxu0 %v2514_v49 }
  0xe1   :  { %2144 = vmatprep.subr.bf16.mxu0 %v2401_v0 }
  0xe4   :  { %2146 = vmatpush3.bf16.msra.mxu0 %v2516_v50 }
  0xe5   :  { %2147 = vmatprep.subr.bf16.mxu0 %v2401_v0 }
  0xe8   :  { %2149 = vmatpush3.bf16.msra.mxu0 %v2518_v51 }
  0xeb   :  { %1794 = vmatmul.mubr.f32.vlgmr.msra.gmra.mrb[0].mxu0 %v2484_v31 }
 0x1be   :  { %v699_v42 = vpop.f32.mrb[0].mxu0 }
 0x1bf   :  { %v2752_v52 = vsub.f32 %v2478_v22, %v699_v42  ;;  %v1795_v55 = vpop.f32.mrb[1].mxu0  ;;  %v1380_v22 = vld [vmem:[%s2872_s2] ss:$0 sm:$0xff] }
 0x1c1   :  { %v704_v59 = vmul.f32 %v2752_v52, %v2752_v52 }
 0x1c3   :  { %v2756_v61 = vand.u32 4294901760, %v704_v59 }
 0x1c5   :  { %v787_v62 = vsub.f32 %v704_v59, %v2756_v61 }
 0x1c7   :  { %v788_v63 = vand.u32 4294901760, %v787_v62 }
 0x1c9   :  { %v789_v2 = vsub.f32 %v787_v62, %v788_v63 }
 0x1cb   :  { %v790_v3 = vand.u32 4294901760, %v789_v2 }
 0x1cd   :  { %1829 = vmatmul.mubr.f32.vlgmr.msra.gmra.mrb[0].mxu1 %v790_v3 }
 0x1ce   :  { %2176 = vmatpush3.bf16.msra.mxu1 %v2594_v41  ;;  %1863 = vmatprep.mubr.msk.f32.mxu1 %vm2402_vm0, %v2403_v1 }
 0x1cf   :  { %2177 = vmatprep.subr.bf16.mxu1 %v2401_v0 }
 0x1d2   :  { %2179 = vmatpush3.bf16.msra.mxu1 %v2602_v57 }
 0x1d3   :  { %2180 = vmatprep.subr.bf16.mxu1 %v2401_v0 }
 0x1d6   :  { %2182 = vmatpush3.bf16.msra.mxu1 %v2609_v8 }
 0x1d7   :  { %2183 = vmatprep.subr.bf16.mxu1 %v2401_v0 }
 0x1da   :  { %2185 = vmatpush3.bf16.msra.mxu1 %v2616_v16 }
 0x1db   :  { %2186 = vmatprep.subr.bf16.mxu1 %v2401_v0 }
 0x1de   :  { %2188 = vmatpush3.bf16.msra.mxu1 %v2622_v17 }
 0x1df   :  { %2189 = vmatprep.subr.bf16.mxu1 %v2401_v0 }
 0x1e2   :  { %2191 = vmatpush3.bf16.msra.mxu1 %v2628_v58 }
 0x1e3   :  { %2192 = vmatprep.subr.bf16.mxu1 %v2401_v0 }
 0x1e6   :  { %2194 = vmatpush3.bf16.msra.mxu1 %v2633_v6 }
 0x1e7   :  { %2195 = vmatprep.subr.bf16.mxu1 %v2401_v0 }
 0x1ea   :  { %2197 = vmatpush3.bf16.msra.mxu1 %v2637_v25 }
 0x1eb   :  { %2198 = vmatprep.subr.bf16.mxu1 %v2401_v0 }
 0x1ed   :  { %1864 = vmatmul.mubr.f32.vlgmr.msra.gmra.mrb[0].mxu1 %v2756_v61 }
 0x1ee   :  { %2200 = vmatpush3.bf16.msra.mxu1 %v2643_v26  ;;  %1898 = vmatprep.mubr.msk.f32.mxu1 %vm2402_vm0, %v2403_v1 }
 0x1ef   :  { %2201 = vmatprep.subr.bf16.mxu1 %v2401_v0 }
 0x1f2   :  { %2203 = vmatpush3.bf16.msra.mxu1 %v2650_v10 }
 0x1f3   :  { %2204 = vmatprep.subr.bf16.mxu1 %v2401_v0 }
 0x1f6   :  { %2206 = vmatpush3.bf16.msra.mxu1 %v2658_v34 }
 0x1f7   :  { %2207 = vmatprep.subr.bf16.mxu1 %v2401_v0 }
 0x1fa   :  { %2209 = vmatpush3.bf16.msra.mxu1 %v2664_v35 }
 0x1fb   :  { %2210 = vmatprep.subr.bf16.mxu1 %v2401_v0 }
 0x1fe   :  { %2212 = vmatpush3.bf16.msra.mxu1 %v2670_v43 }
 0x1ff   :  { %2213 = vmatprep.subr.bf16.mxu1 %v2401_v0 }
 0x202   :  { %2215 = vmatpush3.bf16.msra.mxu1 %v2676_v47 }
 0x203   :  { %2216 = vmatprep.subr.bf16.mxu1 %v2401_v0 }
 0x206   :  { %2218 = vmatpush3.bf16.msra.mxu1 %v2682_v48 }
 0x207   :  { %2219 = vmatprep.subr.bf16.mxu1 %v2401_v0 }
 0x20a   :  { %2221 = vmatpush3.bf16.msra.mxu1 %v2688_v54 }
 0x20b   :  { %2222 = vmatprep.subr.bf16.mxu1 %v2401_v0 }
 0x20d   :  { %1899 = vmatmul.mubr.f32.vlgmr.msra.gmra.mrb[0].mxu1 %v787_v62 }
 0x20e   :  { %2224 = vmatpush3.bf16.msra.mxu1 %v2467_v12  ;;  %1933 = vmatprep.mubr.msk.f32.mxu1 %vm2402_vm0, %v2403_v1 }
 0x20f   :  { %2225 = vmatprep.subr.bf16.mxu1 %v2401_v0 }
 0x212   :  { %2227 = vmatpush3.bf16.msra.mxu1 %v2470_v13 }
 0x213   :  { %2228 = vmatprep.subr.bf16.mxu1 %v2401_v0 }
 0x216   :  { %2230 = vmatpush3.bf16.msra.mxu1 %v2476_v18 }
 0x217   :  { %2231 = vmatprep.subr.bf16.mxu1 %v2401_v0 }
 0x21a   :  { %2233 = vmatpush3.bf16.msra.mxu1 %v2487_v32 }
 0x21b   :  { %2234 = vmatprep.subr.bf16.mxu1 %v2401_v0 }
 0x21e   :  { %2236 = vmatpush3.bf16.msra.mxu1 %v2503_v44 }
 0x21f   :  { %2237 = vmatprep.subr.bf16.mxu1 %v2401_v0 }
 0x222   :  { %2239 = vmatpush3.bf16.msra.mxu1 %v2514_v49 }
 0x223   :  { %2240 = vmatprep.subr.bf16.mxu1 %v2401_v0 }
 0x226   :  { %2242 = vmatpush3.bf16.msra.mxu1 %v2516_v50 }
 0x227   :  { %2243 = vmatprep.subr.bf16.mxu1 %v2401_v0 }
 0x22a   :  { %2245 = vmatpush3.bf16.msra.mxu1 %v2518_v51 }
 0x22b   :  { %2246 = vmatprep.subr.bf16.mxu1 %v2401_v0 }
 0x22d   :  { %1934 = vmatmul.mubr.f32.vlgmr.msra.gmra.mrb[0].mxu1 %v788_v63 }
 0x22e   :  { %2248 = vmatpush3.bf16.msra.mxu1 %v2572_v27  ;;  %1968 = vmatprep.mubr.msk.f32.mxu1 %vm2402_vm0, %v2403_v1 }
 0x22f   :  { %2249 = vmatprep.subr.bf16.mxu1 %v2401_v0 }
 0x232   :  { %2251 = vmatpush3.bf16.msra.mxu1 %v2574_v28 }
 0x233   :  { %2252 = vmatprep.subr.bf16.mxu1 %v2401_v0 }
 0x236   :  { %2254 = vmatpush3.bf16.msra.mxu1 %v2576_v29 }
 0x237   :  { %2255 = vmatprep.subr.bf16.mxu1 %v2401_v0 }
 0x23a   :  { %2257 = vmatpush3.bf16.msra.mxu1 %v2579_v30 }
 0x23b   :  { %2258 = vmatprep.subr.bf16.mxu1 %v2401_v0 }
 0x23e   :  { %2260 = vmatpush3.bf16.msra.mxu1 %v2581_v33 }
 0x23f   :  { %2261 = vmatprep.subr.bf16.mxu1 %v2401_v0 }
 0x242   :  { %2263 = vmatpush3.bf16.msra.mxu1 %v2583_v36 }
 0x243   :  { %2264 = vmatprep.subr.bf16.mxu1 %v2401_v0 }
 0x246   :  { %2266 = vmatpush3.bf16.msra.mxu1 %v2585_v37 }
 0x247   :  { %2267 = vmatprep.subr.bf16.mxu1 %v2401_v0 }
 0x24a   :  { %2269 = vmatpush3.bf16.msra.mxu1 %v2588_v38 }
 0x24b   :  { %2270 = vmatprep.subr.bf16.mxu1 %v2401_v0 }
 0x24d   :  { %1969 = vmatmul.mubr.f32.vlgmr.msra.gmra.mrb[0].mxu1 %v2756_v61 }
 0x24e   :  { %2272 = vmatpush3.bf16.msra.mxu1 %v2467_v12  ;;  %2003 = vmatprep.mubr.msk.f32.mxu1 %vm2402_vm0, %v2403_v1 }
 0x24f   :  { %2273 = vmatprep.subr.bf16.mxu1 %v2401_v0 }
 0x252   :  { %2275 = vmatpush3.bf16.msra.mxu1 %v2470_v13 }
 0x253   :  { %2276 = vmatprep.subr.bf16.mxu1 %v2401_v0 }
 0x256   :  { %2278 = vmatpush3.bf16.msra.mxu1 %v2476_v18 }
 0x257   :  { %2279 = vmatprep.subr.bf16.mxu1 %v2401_v0 }
 0x25a   :  { %2281 = vmatpush3.bf16.msra.mxu1 %v2487_v32  ;;  %v1381_v32 = vld [vmem:[%s2873_s3] ss:$0 sm:$0xff] }
 0x25b   :  { %2282 = vmatprep.subr.bf16.mxu1 %v2401_v0 }
 0x25e   :  { %2284 = vmatpush3.bf16.msra.mxu1 %v2503_v44 }
 0x25f   :  { %2285 = vmatprep.subr.bf16.mxu1 %v2401_v0 }
 0x262   :  { %2287 = vmatpush3.bf16.msra.mxu1 %v2514_v49 }
 0x263   :  { %2288 = vmatprep.subr.bf16.mxu1 %v2401_v0 }
 0x266   :  { %2290 = vmatpush3.bf16.msra.mxu1 %v2516_v50 }
 0x267   :  { %2291 = vmatprep.subr.bf16.mxu1 %v2401_v0 }
 0x26a   :  { %2293 = vmatpush3.bf16.msra.mxu1 %v2518_v51 }
 0x26d   :  { %2004 = vmatmul.mubr.f32.vlgmr.msra.gmra.mrb[0].mxu1 %v2756_v61 }
 0x340   :  { %v1342_v1 = vpop.f32.mrb[0].mxu1 }
 0x341   :  { %v2294_v12 = vadd.f32 1e-05, %v1342_v1  ;;  %v2005_v13 = vpop.f32.mrb[1].mxu1 }
 0x343   :  { %2323 = vrsqrt.f32 %v2294_v12 }
 0x34d   :  { %v2324_v18 = vpop.eup %2323 }
 0x34e   :  { %v1347_v31 = vmul.f32 %v2324_v18, %v2752_v52 }
 0x350   :  { %v1354_v0 = vmul.f32 %v1380_v22, %v1347_v31 }
 0x352   :  { %v1362_v44 = vadd.f32 %v1381_v32, %v1354_v0 }
 0x354   :  { %1363 = vst [vmem:[#allocation7] sm:$0xff] %v1362_v44 }
 0x355   :  { %2380 = shalt.err (!%p2377_p6)
}
 0x356   :  { %s2381_s21 = scalar_lea.hbm %s2874_s4, 128 }
 0x357   :  { %p2382_p7 = scmp.ne.s32.totalorder %s2874_s4, %s2381_s21  ;;  %p2385_p8 = scmp.lt.u32.totalorder %s2381_s21, %s2874_s4 }
 0x359   :  { %p2387_p9 = pnand %p2385_p8, %p2382_p7 }
 0x35b   :  { %2390 = shalt.err (!%p2387_p9)
}
 0x35c   :  { %1373 = dma.vmem_to_hbm [thread:$0]  %s1371_s18, 128, %s2874_s4, [#allocation4]  }
 0x35d   :  { %2395 = dma.done.wait [#allocation4], 128  }
 0x35e   :  { %2396 = vsyncadd [#allocation4], 4294967168 }
 0x35f   :  { %1377 = vsyncpa [#allocation3], 1 }
 0x360   :  { %1378 = vsyncpa [#allocation6], 1 }
 0x361   :  { %1379 = vsyncpa [#allocation4], 1 }

</bundles_post_ra>
